<compile_context>
chip_gen: v7x
topology: tpu7x:2x2x1
jax: 0.10.0
libtpu: 0.0.40
codegen_flags: <defaults>
</compile_context>

<pallas_src>
import math

import jax
import jax.numpy as jnp
from jax import lax
from jax.experimental import pallas as pl
from jax.experimental.pallas import tpu as pltpu


def _round_up(x, m):
    return ((x + m - 1) // m) * m


# ----------------------------------------------------------------------------
# Per-generation tile caps and VMEM limits.
# ----------------------------------------------------------------------------
def _device_tile_config():
    kind = ""
    try:
        kind = jax.devices()[0].device_kind.lower()
    except Exception:
        pass
    if ("v5e" in kind) or ("v5 lite" in kind) or ("v5lite" in kind):
        # v5e: ~240 flop/byte balance point; 512x1024 tiles are enough.
        return dict(tm=512, tn=1024, tk=1024, vmem=64 * 1024 * 1024)
    if "v6" in kind:
        # v6e: needs ~680 flop/byte to feed the MXU; large tiles, 128 MiB VMEM.
        return dict(tm=1024, tn=2048, tk=1024, vmem=80 * 1024 * 1024)
    if "7" in kind:
        # v7x: only 64 MiB VMEM per TC; 1024^3 is already compute-bound.
        return dict(tm=1024, tn=1024, tk=1024, vmem=40 * 1024 * 1024)
    # Unknown generation: conservative.
    return dict(tm=512, tn=1024, tk=512, vmem=48 * 1024 * 1024)


# ----------------------------------------------------------------------------
# Pallas kernels.  One (tm, tn) output tile.  W tile is (tn, tk) in native
# (out_features, in_features) layout; the MXU handles the transposed operand
# via dot_general contracting both last dims.
#
# NOTE: the last M tile may be ragged; its out-of-bounds rows carry garbage
# through the matmul but the output store is masked row-wise.  Do NOT add any
# cross-row (M-coupled) epilogue to these kernels.
# ----------------------------------------------------------------------------
def _matmul_bias_kernel(x_ref, w_ref, b_ref, o_ref, acc_ref):
    """Grid = (M tiles, N tiles, K tiles); K is the trailing reduction axis."""
    @pl.when(pl.program_id(2) == 0)
    def _init():
        acc_ref[...] = jnp.zeros_like(acc_ref)

    acc_ref[...] += lax.dot_general(
        x_ref[...], w_ref[...],
        dimension_numbers=(((1,), (1,)), ((), ())),
        preferred_element_type=jnp.float32)

    @pl.when(pl.program_id(2) == pl.num_programs(2) - 1)
    def _finalize():
        o_ref[...] = (acc_ref[...] + b_ref[...]).astype(o_ref.dtype)


def _matmul_bias_kernel_single_k(x_ref, w_ref, b_ref, o_ref):
    """Whole K in one tile: no accumulator scratch, no init/finalize branches."""
    acc = lax.dot_general(
        x_ref[...], w_ref[...],
        dimension_numbers=(((1,), (1,)), ((), ())),
        preferred_element_type=jnp.float32)
    o_ref[...] = (acc + b_ref[...]).astype(o_ref.dtype)


# ----------------------------------------------------------------------------
# One-time parameter preparation (padding + bf16 cast) -- cacheable when the
# weights are static (eval path).
# ----------------------------------------------------------------------------
def prepare_linear_params(weight, bias, *, compute_dtype=jnp.bfloat16, cfg=None):
    """weight: (N, K) f32, bias: (N,) f32 -> padded bf16 weight, f32 bias row.

    N is padded to a multiple of tn (exact grid, lane-dense unmasked stores);
    K is padded to a multiple of tk (every reduction tile full; zero columns
    contribute nothing).
    """
    cfg = cfg or _device_tile_config()
    N, K = weight.shape
    tn = min(cfg["tn"], _round_up(N, 128))
    tk = min(cfg["tk"], _round_up(K, 128))
    Npad = _round_up(N, tn)
    Kpad = _round_up(K, tk)
    w = weight
    if (Npad, Kpad) != (N, K):
        w = jnp.pad(w, ((0, Npad - N), (0, Kpad - K)))
    b = bias
    if Npad != N:
        b = jnp.pad(b, (0, Npad - N))
    return (w.astype(compute_dtype),
            b.reshape(1, Npad).astype(jnp.float32),
            tn, tk, N, K)


# ----------------------------------------------------------------------------
# Tiled matmul wrapper.
# ----------------------------------------------------------------------------
def pallas_linear(x2d, prepared, *, cfg=None, compute_dtype=jnp.bfloat16,
                  out_dtype=jnp.float32):
    """x2d: (M, K), prepared params from prepare_linear_params -> (M, N) f32."""
    cfg = cfg or _device_tile_config()
    w, bias2d, tn, tk, N, K = prepared
    Npad, Kpad = w.shape
    M = x2d.shape[0]
    assert x2d.shape[1] == K

    # Single activation cast (directly to the MXU dtype), pad K if needed.
    if Kpad != K:
        x2d = jnp.pad(x2d, ((0, 0), (0, Kpad - K)))
    x2d = x2d.astype(compute_dtype)

    tm = min(cfg["tm"], _round_up(M, 8))
    grid_m = pl.cdiv(M, tm)     # last M tile may be ragged (masked store)
    grid_n = Npad // tn         # exact by construction
    grid_k = Kpad // tk         # exact by construction

    # Megacore: make sure the 'parallel' grid has >= 2 programs when the
    # problem allows it (v7x shards parallel axes across its 2 TensorCores).
    if grid_m == 1 and grid_n == 1:
        if tn % 256 == 0:
            tn //= 2
            grid_n = Npad // tn
        elif M > 8:
            tm = _round_up(pl.cdiv(M, 2), 8)
            grid_m = pl.cdiv(M, tm)

    out_itemsize = jnp.dtype(out_dtype).itemsize
    cost = pl.CostEstimate(
        flops=2 * M * Kpad * Npad,
        transcendentals=0,
        bytes_accessed=(grid_n * M * Kpad * jnp.dtype(compute_dtype).itemsize
                        + grid_m * Npad * Kpad * jnp.dtype(compute_dtype).itemsize
                        + M * Npad * out_itemsize),
    )

    if grid_k == 1:
        grid = (grid_m, grid_n)
        kernel = _matmul_bias_kernel_single_k
        in_specs = [
            pl.BlockSpec((tm, tk), lambda i, j: (i, 0)),   # X tile
            pl.BlockSpec((tn, tk), lambda i, j: (j, 0)),   # W tile (N, K)
            pl.BlockSpec((1, tn), lambda i, j: (0, j)),    # bias tile
        ]
        out_specs = pl.BlockSpec((tm, tn), lambda i, j: (i, j))
        scratch = []
        dims = ("parallel", "parallel")
    else:
        grid = (grid_m, grid_n, grid_k)
        kernel = _matmul_bias_kernel
        in_specs = [
            pl.BlockSpec((tm, tk), lambda i, j, k: (i, k)),
            pl.BlockSpec((tn, tk), lambda i, j, k: (j, k)),
            pl.BlockSpec((1, tn), lambda i, j, k: (0, j)),
        ]
        out_specs = pl.BlockSpec((tm, tn), lambda i, j, k: (i, j))
        scratch = [pltpu.VMEM((tm, tn), jnp.float32)]
        dims = ("parallel", "parallel", "arbitrary")

    out = pl.pallas_call(
        kernel,
        out_shape=jax.ShapeDtypeStruct((M, Npad), out_dtype),
        grid_spec=pltpu.PrefetchScalarGridSpec(
            num_scalar_prefetch=0,
            grid=grid,
            in_specs=in_specs,
            out_specs=out_specs,
            scratch_shapes=scratch,
        ),
        compiler_params=pltpu.CompilerParams(
            dimension_semantics=dims,
            vmem_limit_bytes=cfg["vmem"],
        ),
        cost_estimate=cost,
    )(x2d, w, bias2d)

    return out if Npad == N else out[:, :N]


# ----------------------------------------------------------------------------
# Gaussian / Laplace parameter distributions (plain-JAX glue).
# ----------------------------------------------------------------------------
class GaussianParam:
    def __init__(self, mu, rho):
        self.mu = mu
        self.rho = rho

    @property
    def sigma(self):
        return jax.nn.softplus(self.rho)          # log(1 + exp(rho)), stable

    def sample(self, key):
        eps = jax.random.normal(key, self.mu.shape, self.mu.dtype)
        return self.mu + self.sigma * eps

    def compute_kl(self, other):
        b1 = jnp.square(self.sigma)
        b0 = jnp.square(other.sigma)
        term1 = jnp.log(b0 / b1)
        term2 = jnp.square(self.mu - other.mu) / b0
        term3 = b1 / b0
        return (0.5 * (term1 + term2 + term3 - 1.0)).sum()


class LaplaceParam:
    def __init__(self, mu, rho):
        self.mu = mu
        self.rho = rho

    @property
    def scale(self):
        return jax.nn.softplus(self.rho)

    def sample(self, key):
        u = jax.random.uniform(key, self.mu.shape, self.mu.dtype)
        eps = 0.999 * u - 0.49999
        return self.mu - self.scale * jnp.sign(eps) * jnp.log1p(-2.0 * jnp.abs(eps))

    def compute_kl(self, other):
        b1 = self.scale
        b0 = other.scale
        aux = jnp.abs(self.mu - other.mu)
        term1 = jnp.log(b0 / b1)
        term2 = aux / b0
        term3 = (b1 / b0) * jnp.exp(-aux / b1)
        return (term1 + term2 + term3 - 1.0).sum()


# ----------------------------------------------------------------------------
# ProbLinear (probabilistic linear layer), eval + sampled forward.
# ----------------------------------------------------------------------------
class ProbLinearPallas:
    def __init__(self, in_features, out_features, rho_prior,
                 prior_dist='gaussian', init_prior='random',
                 key=jax.random.PRNGKey(0)):
        self.in_features = in_features
        self.out_features = out_features
        sigma_weights = 1.0 / math.sqrt(in_features)

        if init_prior not in ('random', 'zeros'):
            raise RuntimeError('Wrong type of prior initialisation!')

        # Posterior init (matches the reference: trunc_normal(0, s, -2s, 2s)).
        weights_mu = sigma_weights * jax.random.truncated_normal(
            key, -2.0, 2.0, (out_features, in_features), jnp.float32)
        bias_mu = jnp.zeros((out_features,), jnp.float32)
        weights_rho = jnp.full((out_features, in_features), rho_prior, jnp.float32)
        bias_rho = jnp.full((out_features,), rho_prior, jnp.float32)

        if prior_dist == 'gaussian':
            dist = GaussianParam
        elif prior_dist == 'laplace':
            dist = LaplaceParam
        else:
            raise RuntimeError(f'Wrong prior_dist {prior_dist}')

        self.weight = dist(weights_mu, weights_rho)
        self.bias = dist(bias_mu, bias_rho)
        self.weight_prior = dist(weights_mu, weights_rho)   # fixed
        self.bias_prior = dist(bias_mu, bias_rho)            # fixed
        self.kl_div = 0.0

        self._cfg = _device_tile_config()
        self._eval_cache = None   # padded / bf16 posterior means, built lazily
        # TODO(synk): nn.Parameter autograd, init_layer-based prior init and
        # __deepcopy__ bookkeeping are not ported; parameters are plain jnp
        # arrays (forward path only).

    def _prepared_eval_params(self):
        # Posterior means are static in this forward-only port, so the padded
        # bf16 weight / bias are prepared once and reused across eval calls
        # (removes the per-call transpose/pad/cast HBM passes).
        if self._eval_cache is None:
            self._eval_cache = prepare_linear_params(
                self.weight.mu, self.bias.mu, cfg=self._cfg)
        return self._eval_cache

    def __call__(self, x, sample=False, key=None, training=False):
        if training or sample:
            kw, kb = jax.random.split(key)
            weight = self.weight.sample(kw)
            bias = self.bias.sample(kb)
            prepared = prepare_linear_params(weight, bias, cfg=self._cfg)
        else:
            prepared = self._prepared_eval_params()

        if training:
            self.kl_div = (self.weight.compute_kl(self.weight_prior)
                           + self.bias.compute_kl(self.bias_prior))

        lead = x.shape[:-1]
        x2d = x.reshape(-1, self.in_features)     # single bf16 cast in kernel wrapper
        out2d = pallas_linear(x2d, prepared, cfg=self._cfg)
        return out2d.reshape(*lead, self.out_features)


# ----------------------------------------------------------------------------
if __name__ == "__main__":
    key = jax.random.PRNGKey(0)
    k_x, k_params, k_sample = jax.random.split(key, 3)

    # Small shapes consistent with the module: batch=2, seq=8, hidden=32 -> 64.
    batch, seq, in_features, out_features = 2, 8, 32, 64
    rho_prior = math.log(math.exp(0.03) - 1.0)

    x = jax.random.normal(k_x, (batch, seq, in_features), dtype=jnp.float32)
    layer = ProbLinearPallas(in_features, out_features, rho_prior, key=k_params)

    # Eval-mode forward (weight = mu, bias = mu), PyTorch F.linear semantics.
    out = jax.block_until_ready(layer(x, sample=False))
    assert out.shape == (batch, seq, out_features)

    # Reference with the same bf16 operand precision (f32 accumulation).
    x_bf = x.reshape(-1, in_features).astype(jnp.bfloat16)
    w_bf = layer.weight.mu.astype(jnp.bfloat16)
    ref = (jnp.dot(x_bf, w_bf.T, preferred_element_type=jnp.float32)
           + layer.bias.mu).reshape(batch, seq, out_features)
    assert jnp.max(jnp.abs(out - ref)) < 1e-2

    # Loose check against the full-f32 linear (only bf16 operand rounding).
    ref32 = jnp.einsum('bsk,nk->bsn', x, layer.weight.mu) + layer.bias.mu
    assert jnp.max(jnp.abs(out - ref32)) < 1e-1

    # Second eval call exercises the cached-parameter path.
    out2 = jax.block_until_ready(layer(x, sample=False))
    assert jnp.max(jnp.abs(out2 - out)) == 0.0

    # Exercise the sampled path (sample=True branch of forward()).
    out_s = jax.block_until_ready(layer(x, sample=True, key=k_sample))
    assert out_s.shape == (batch, seq, out_features)

    print("KERNEL_OK")
</pallas_src>

<mosaic_0001>
module attributes {stable_mosaic.version = 11 : i64} {
  func.func @_matmul_bias_kernel_single_k(%arg0: i32, %arg1: i32, %arg2: memref<8x128xbf16, #tpu.memory_space<vmem>>, %arg3: memref<128x128xbf16, #tpu.memory_space<vmem>>, %arg4: memref<1x128xf32, #tpu.memory_space<vmem>>, %arg5: memref<8x128xf32, #tpu.memory_space<vmem>>) attributes {dimension_semantics = [#tpu.dimension_semantics<parallel>, #tpu.dimension_semantics<parallel>], iteration_bounds = array<i64: 2, 1>, scalar_prefetch = 0 : i64, scratch_operands = 0 : i64, tpu.core_type = #tpu.core_type<tc>, window_params = [{transform_indices = @transform_0, window_bounds = array<i64: 8, 128>}, {transform_indices = @transform_1, window_bounds = array<i64: 128, 128>}, {transform_indices = @transform_2, window_bounds = array<i64: 1, 128>}, {transform_indices = @transform_3, window_bounds = array<i64: 8, 128>}]} {
    %c0 = arith.constant 0 : index
    %c0_0 = arith.constant 0 : index
    %0 = vector.load %arg2[%c0, %c0_0] : memref<8x128xbf16, #tpu.memory_space<vmem>>, vector<8x128xbf16>
    %c0_1 = arith.constant 0 : index
    %c0_2 = arith.constant 0 : index
    %1 = vector.load %arg3[%c0_1, %c0_2] : memref<128x128xbf16, #tpu.memory_space<vmem>>, vector<128x128xbf16>
    %cst = arith.constant dense<0.000000e+00> : vector<8x128xf32>
    %2 = tpu.matmul %0, %1, %cst {dimension_numbers = #tpu.dot_dimension_numbers<[1], [1], [0], [0], [0, 0, 1, 0], [], []>} : vector<8x128xbf16>, vector<128x128xbf16>, vector<8x128xf32> -> vector<8x128xf32>
    %c0_3 = arith.constant 0 : index
    %c0_4 = arith.constant 0 : index
    %3 = vector.load %arg4[%c0_3, %c0_4] : memref<1x128xf32, #tpu.memory_space<vmem>>, vector<1x128xf32>
    %4 = vector.broadcast %3 : vector<1x128xf32> to vector<8x128xf32>
    %5 = arith.addf %2, %4 : vector<8x128xf32>
    %c0_5 = arith.constant 0 : index
    %c0_6 = arith.constant 0 : index
    %6 = vector.load %arg5[%c0_5, %c0_6] : memref<8x128xf32, #tpu.memory_space<vmem>>, vector<8x128xf32>
    tpu.vector_store %arg5[%c0_5, %c0_6], %5 {strides = array<i32>} : memref<8x128xf32, #tpu.memory_space<vmem>>, vector<8x128xf32>,
    return
  }
  func.func @transform_0(%arg0: i32, %arg1: i32) -> (i32, i32) {
    %c0_i32 = arith.constant 0 : i32
    %c0_i32_0 = arith.constant 0 : i32
    return %arg0, %c0_i32 : i32, i32
  }
  func.func @transform_1(%arg0: i32, %arg1: i32) -> (i32, i32) {
    %c0_i32 = arith.constant 0 : i32
    %c0_i32_0 = arith.constant 0 : i32
    return %arg1, %c0_i32 : i32, i32
  }
  func.func @transform_2(%arg0: i32, %arg1: i32) -> (i32, i32) {
    %c0_i32 = arith.constant 0 : i32
    %c0_i32_0 = arith.constant 0 : i32
    return %c0_i32, %arg1 : i32, i32
  }
  func.func @transform_3(%arg0: i32, %arg1: i32) -> (i32, i32) {
    %c0_i32 = arith.constant 0 : i32
    return %arg0, %arg1 : i32, i32
  }
}

</mosaic_0001>

<bundles_post_ra>
// kernel: tpu_custom_call.1
= control target key start
LH: loop header
LB: loop body
LE: loop exit
PB: predicated region body
PF: predicated region fallthrough
CT: control target
= control target key end

     0   :  { %8 = vsyncpa [#allocation3], 0  ;;  %s1003_s0 = inlined_call_operand.hbm [shape: bf16[16,128], index: 0, kind: input, shape index: {}]   ;;  %s1004_s1 = inlined_call_operand.hbm [shape: bf16[128,128], index: 1, kind: input, shape index: {}]   ;;  %s1005_s2 = inlined_call_operand.vmem [shape: f32[1,128], index: 2, kind: input, shape index: {}]   ;;  %s1006_s3 = inlined_call_operand.hbm [shape: f32[16,128], index: 3, kind: output, shape index: {}]  }
   0x1   :  { %10 = vsyncpa [#allocation3 + $0x1], 0 }
   0x2   :  { %11 = vsyncpa [#allocation6], 0 }
   0x3   :  { %12 = vsyncpa [#allocation4], 0 }
   0x4   :  { %14 = vsyncpa [#allocation4 + $0x1], 0  ;;  %s782_s12 = smov 0   ;;  %s784_s13 = smov 0  }
   0x5   :  { %s786_s14 = smov 0   ;;  %s788_s15 = smov 0  }
   0x6   :  { %s790_s16 = smov 0   ;;  %s792_s17 = smov 0  }
   0x7 LB: > { %s470_s18 = sadd.s32 4294967295, %s753_s17   ;;  %s471_s19 = sadd.s32 4294967294, %s753_s17   ;;  %s753_s17 = sphi %s792_s17, %s20_s17   ;;  %s749_s16 = sphi %s790_s16, %s1030_s16   ;;  %s745_s15 = sphi %s788_s15, %s1029_s15   ;;  %s741_s14 = sphi %s786_s14, %s1028_s14   ;;  %s737_s13 = sphi %s784_s13, %s1027_s13   ;;  %s733_s12 = sphi %s782_s12, %s1026_s12  }
   0x8   : > { %p52_p0 = scmp.ne.s32.totalorder %s737_s13, %s733_s12  ;;  %p816_p1 = scmp.eq.s32.totalorder %s470_s18, 0 }
   0x9   : > { %p820_p2 = scmp.eq.s32.totalorder %s470_s18, 1  ;;  %p136_p3 = scmp.eq.s32.totalorder %s471_s19, 1 }
   0xa   : > { %s1011_s20 = scalar_select %p816_p1, 1, 0 }
   0xb   : > { %s1012_s21 = scalar_select %p820_p2, 1, 0 }
   0xc   : > { %p826_p4 = por %p816_p1, %p52_p0  ;;  %p472_p5 = scmp.ge.s32.totalorder %s753_s17, 1 }
   0xd   : > { %p831_p6 = por %p136_p3, %p52_p0  ;;  %p143_p7 = scmp.lt.s32.totalorder %s753_s17, 3 }
   0xe   : > { %s1013_s22 = scalar_select %p826_p4, 1, 0 }
   0xf   : > { %s1014_s23 = scalar_select %p831_p6, 1, 0 }
  0x10   : > { %p836_p8 = pnand %p472_p5, %p143_p7  ;;  %s755_s25 = smov [#allocation5]  }
  0x11   : > { %s158_s26 = sshll.u32 %s755_s25, 4  ;;  %s32_s28 = sadd.s32 1, %s749_s16  ;;  %s159_s26 = int_to_ptr.vmem [resolvable:$true] %s158_s26 }
  0x12   : > { %s1015_s24 = scalar_select %p836_p8, 1, 0 }
  0x13   : > { %p532_p9 = pneg %p836_p8  ;;  %s609_s4 = scalar_lea.hbm %s1004_s1, 1024 }
  0x14   : > { %p610_p12 = scmp.ne.s32.totalorder %s1004_s1, %s609_s4  ;;  %p616_p5 = scmp.lt.u32.totalorder %s609_s4, %s1004_s1 }
  0x15   : > { %p845_p11 = pnand %p532_p9, %p816_p1 }
  0x17   : > { %p611_p13 = pneg %p845_p11 }
  0x19   : > { %p612_p0 = pnand %p611_p13, %p610_p12 }
  0x1b   : > { %p613_p3 = pneg %p612_p0 }
  0x1d   : > { %p618_p7 = pnand %p616_p5, %p613_p3 }
  0x1f   : > { %621 = shalt.err (!%p618_p7)
}
  0x20   : > { %s622_s9 = scalar_lea.vmem %s159_s26, 1024  ;;  %p630_p1 = scmp.lt.s32.totalorder %s159_s26, %s159_s26 }
  0x21   : > { %p623_p9 = scmp.ne.s32.totalorder %s159_s26, %s622_s9  ;;  %p631_p4 = scmp.lt.s32.totalorder %s622_s9, %s622_s9 }
  0x23   : > { %p625_p10 = pnand %p623_p9, %p611_p13  ;;  %p632_p8 = por %p631_p4, %p630_p1 }
  0x25   : > { %p626_p6 = pneg %p625_p10 }
  0x27   : > { %p633_p2 = pnand %p632_p8, %p626_p6 }
  0x29   : > { %636 = shalt.err (!%p633_p2)
}
  0x2a   : > { %s756_s10 = smov 64   ;;  %s757_s11 = smov 4  }
  0x2b   : > { %535 = dma.hbm_to_vmem [thread:$0]  (!%p845_p11), %s1004_s1, 1024, %s159_s26, [#allocation6], %s756_s10, %s756_s10, %s757_s11  }
  0x2c   : > { %p34_p1 = scmp.ge.s32.totalorder %s32_s28, 2  ;;  %s39_s25 = sadd.s32 1, %s741_s14 }
  0x2d   : > { %p46_p2 = scmp.ne.s32.totalorder %s741_s14, %s737_s13  ;;  %p47_p4 = scmp.eq.s32.totalorder %s753_s17, 0 }
  0x2e   : > { %s1032_s28 = smov (%p34_p1, %s32_s28), 0  ;;  %p1018_p8 = scmp.ne.s32.totalorder %s1012_s21, 0 }
  0x2f   : > { %p872_p6 = por %p47_p4, %p46_p2  ;;  %s36_s27 = ssub.s32 %s749_s16, %s1032_s28 }
  0x30   : > { %p878_p10 = por %p1018_p8, %p46_p2  ;;  %p545_p12 = scmp.lt.s32.totalorder %s753_s17, 2 }
  0x31   : > { %p37_p11 = scmp.eq.s32.totalorder %s36_s27, 0  ;;  %s178_s26 = sand.u32 1, %s741_s14  }
  0x32   : > { %s476_s4 = sshll.u32 %s178_s26, 2  ;;  %s477_s6 = sshll.u32 %s749_s16, 6 }
  0x33   : > { %s887_s5 = scalar_select %p37_p11, %s741_s14, %s39_s25  }
  0x34   : > { %s893_s9 = scalar_lea.hbm %s1003_s0, %s477_s6  ;;  %s182_s21 = scalar_lea.vmem [#allocation2], %s476_s4 }
  0x35   : > { %s189_s10 = sshll.u32 %s182_s21, 4  ;;  %p899_p13 = pnand %p545_p12, %p872_p6  ;;  %s895_s10 = int_to_ptr.vmem [resolvable:$true] %s189_s10 }
  0x36   : > { %s179_s18 = scalar_lea.sflag [#allocation3], %s178_s26  ;;  %s637_s19 = scalar_lea.hbm %s893_s9, 64 }
  0x37   : > { %p638_p0 = scmp.ne.s32.totalorder %s893_s9, %s637_s19  ;;  %p639_p3 = pneg %p899_p13 }
  0x38   : > { %s642_s4 = scalar_lea.hbm %s1003_s0, 128  ;;  %p643_p9 = scmp.lt.u32.totalorder %s893_s9, %s1003_s0 }
  0x39   : > { %p640_p5 = pnand %p639_p3, %p638_p0  ;;  %p644_p1 = scmp.lt.u32.totalorder %s642_s4, %s637_s19 }
  0x3a   : > { %p646_p4 = scmp.lt.u32.totalorder %s637_s19, %s893_s9 }
  0x3b   : > { %p641_p7 = pneg %p640_p5  ;;  %p645_p2 = por %p644_p1, %p643_p9 }
  0x3d   : > { %p647_p6 = por %p646_p4, %p645_p2 }
  0x3f   : > { %p648_p8 = pnand %p647_p6, %p641_p7 }
  0x41   : > { %651 = shalt.err (!%p648_p8)
}
  0x42   : > { %s652_s26 = scalar_lea.vmem %s895_s10, 64  ;;  %s758_s7 = smov [#allocation2]  }
  0x43   : > { %p653_p12 = scmp.ne.s32.totalorder %s895_s10, %s652_s26  ;;  %s657_s8 = sshll.u32 %s758_s7, 4  ;;  %s658_s8 = int_to_ptr.vmem [resolvable:$false] %s657_s8 }
  0x44   : > { %s659_s21 = scalar_lea.vmem %s658_s8, 128  ;;  %p660_p5 = scmp.lt.s32.totalorder %s895_s10, %s658_s8 }
  0x45   : > { %p655_p11 = pnand %p653_p12, %p639_p3  ;;  %p661_p9 = scmp.lt.s32.totalorder %s659_s21, %s652_s26 }
  0x47   : > { %p656_p0 = pneg %p655_p11  ;;  %p662_p1 = por %p661_p9, %p660_p5 }
  0x49   : > { %p663_p2 = pnand %p662_p1, %p656_p0 }
  0x4b   : > { %666 = shalt.err (!%p663_p2)
}
  0x4c   : > { %539 = dma.hbm_to_vmem [thread:$0]  (!%p899_p13), %s893_s9, 64, %s895_s10, %s179_s18  }
  0x4d   : > { %p1021_p7 = scmp.ne.s32.totalorder %s1015_s24, 0 }
  0x4e   : > { %s931_s19 = sand.u32 (!%p1021_p7), 1, %s737_s13   ;;  %p1022_p3 = scmp.ne.s32.totalorder (!%p1021_p7), %s1013_s22, 0 }
  0x4f   : > { %198 = sbr.rel (%p1021_p7) target bundleno = 383 (0x17f), region = 32  ;;  %s479_s25 = sshll.u32 (!%p1021_p7), %s931_s19, 2 }
  0x50   : > { %s201_s27 = scalar_lea.sflag (!%p1021_p7), [#allocation3], %s931_s19  ;;  %s935_s4 = scalar_lea.vmem (!%p1021_p7), [#allocation2], %s479_s25 }
  0x56   : > { %720 = dma.done.wait (%p1022_p3), %s201_s27, 64  }
  0x57   : > { %722 = vsyncadd (%p1022_p3), %s201_s27, 4294967232  ;;  %p1023_p13 = scmp.ne.s32.totalorder %s1011_s20, 0 }
  0x59   : > { %724 = dma.done.wait (%p1023_p13), [#allocation6], 1024  }
  0x5a   : > { %726 = vsyncadd (%p1023_p13), [#allocation6], 4294966272  ;;  %v759_v0 = vmov 0.0   ;;  %vm760_vm0 = vmmov 0   ;;  %v601_v1 = vld [vmem:[#allocation5] sm:$0xff]   ;;  %v602_v2 = vld [vmem:[#allocation5 + $0x8] sm:$0xff]  }
  0x5b   : > { %504 = vmatprep.subr.bf16.mxu0 %v759_v0  ;;  %520 = vmatprep.mubr.msk.bf16.mxu0 %vm760_vm0, %v759_v0  ;;  %v603_v3 = vld [vmem:[#allocation5 + $0x10] sm:$0xff]   ;;  %v604_v4 = vld [vmem:[#allocation5 + $0x18] sm:$0xff]   ;;  %v605_v5 = vld [vmem:[#allocation5 + $0x20] sm:$0xff]   ;;  %s481_s20 = sshll.u32 %s931_s19, 3  ;;  %s492_s9 = sshll.u32 %s745_s15, 7 }
  0x5c   : > { %505 = vmatpush3.bf16.xpose.msra.mxu0 %v601_v1  ;;  %v606_v6 = vld [vmem:[#allocation5 + $0x28] sm:$0xff]   ;;  %v607_v7 = vld [vmem:[#allocation5 + $0x30] sm:$0xff]   ;;  %v608_v8 = vld [vmem:[#allocation5 + $0x38] sm:$0xff]   ;;  %s233_s10 = scalar_lea.vmem [#allocation7], %s481_s20  ;;  %s954_s6 = scalar_lea.hbm %s1006_s3, %s492_s9 }
  0x5d   : > { %506 = vmatprep.subr.bf16.mxu0 %v759_v0  ;;  %v239_v9 = vld [vmem:[%s935_s4] sm:$0xf]  ;;  %s367_s11 = sshll.u32 %s233_s10, 4  ;;  %s353_s26 = scalar_lea.sflag [#allocation4], %s931_s19  ;;  %s956_s11 = int_to_ptr.vmem [resolvable:$true] %s367_s11 }
  0x5e   : > { %v482_v10 = vld [vmem:[%s1005_s2] ss:$0 sm:$0xff]  ;;  %s667_s15 = scalar_lea.vmem %s956_s11, 128  ;;  %s761_s7 = smov [#allocation7]  }
  0x5f   : > { %p668_p4 = scmp.ne.s32.totalorder %s956_s11, %s667_s15  ;;  %s671_s8 = sshll.u32 %s761_s7, 4  ;;  %s672_s8 = int_to_ptr.vmem [resolvable:$false] %s671_s8 }
  0x60   : > { %s673_s21 = scalar_lea.vmem %s672_s8, 256  ;;  %p674_p12 = scmp.lt.s32.totalorder %s956_s11, %s672_s8 }
  0x61   : > { %p669_p6 = pnand %p668_p4, %p878_p10  ;;  %p675_p11 = scmp.lt.s32.totalorder %s673_s21, %s667_s15 }
  0x63   : > { %p670_p8 = pneg %p669_p6  ;;  %p676_p0 = por %p675_p11, %p674_p12 }
  0x64   : > { %507 = vmatpush3.bf16.xpose.msra.mxu0 %v602_v2 }
  0x65   : > { %508 = vmatprep.subr.bf16.mxu0 %v759_v0  ;;  %p677_p5 = pnand %p676_p0, %p670_p8 }
  0x6c   : > { %509 = vmatpush3.bf16.xpose.msra.mxu0 %v603_v3 }
  0x6d   : > { %510 = vmatprep.subr.bf16.mxu0 %v759_v0 }
  0x74   : > { %511 = vmatpush3.bf16.xpose.msra.mxu0 %v604_v4 }
  0x75   : > { %512 = vmatprep.subr.bf16.mxu0 %v759_v0 }
  0x7c   : > { %513 = vmatpush3.bf16.xpose.msra.mxu0 %v605_v5 }
  0x7d   : > { %514 = vmatprep.subr.bf16.mxu0 %v759_v0 }
  0x84   : > { %515 = vmatpush3.bf16.xpose.msra.mxu0 %v606_v6 }
  0x85   : > { %516 = vmatprep.subr.bf16.mxu0 %v759_v0 }
  0x8c   : > { %517 = vmatpush3.bf16.xpose.msra.mxu0 %v607_v7 }
  0x8d   : > { %518 = vmatprep.subr.bf16.mxu0 %v759_v0 }
  0x94   : > { %519 = vmatpush3.bf16.xpose.msra.mxu0 %v608_v8 }
  0x9b   : > { %521 = vmatmul.mubr.bf16.vlgmr.msra.gmra.mrb[0].mxu0 %v239_v9 }
 0x16e   : > { %v345_v11 = vpop.f32.mrb[0].mxu0 }
 0x16f   : > { %v346_v12 = vadd.f32 %v482_v10, %v345_v11  ;;  %v522_v13 = vpop.f32.mrb[1].mxu0 }
 0x170   : > { %v348_v14 = vpop.f32.mrb[2].mxu0 }
 0x171   : > { %351 = vst [vmem:[%s233_s10] sm:$0xff] %v346_v12  ;;  %v523_v15 = vpop.f32.mrb[3].mxu0 }
 0x172   : > { %680 = shalt.err (!%p677_p5)
}
 0x173   : > { %s681_s19 = scalar_lea.hbm %s954_s6, 128  ;;  %s685_s4 = scalar_lea.hbm %s1006_s3, 256 }
 0x174   : > { %p682_p9 = scmp.ne.s32.totalorder %s954_s6, %s681_s19  ;;  %p686_p7 = scmp.lt.u32.totalorder %s954_s6, %s1006_s3 }
 0x175   : > { %p687_p3 = scmp.lt.u32.totalorder %s685_s4, %s681_s19  ;;  %p689_p4 = scmp.lt.u32.totalorder %s681_s19, %s954_s6 }
 0x176   : > { %p683_p1 = pnand %p682_p9, %p878_p10 }
 0x177   : > { %p688_p13 = por %p687_p3, %p686_p7 }
 0x178   : > { %p684_p2 = pneg %p683_p1 }
 0x179   : > { %p690_p6 = por %p689_p4, %p688_p13 }
 0x17b   : > { %p691_p8 = pnand %p690_p6, %p684_p2 }
 0x17d   : > { %694 = shalt.err (!%p691_p8)
}
 0x17e   : > { %530 = dma.vmem_to_hbm [thread:$0]  (%p878_p10), %s956_s11, 128, %s954_s6, %s353_s26  }
 0x17f PF: > { %s379_s24 = sand.u32 1, %s733_s12   ;;  %p1024_p12 = scmp.ne.s32.totalorder %s1014_s23, 0 }
 0x180   : > { %p1025_p11 = scmp.ge.s32.totalorder %s753_s17, 2  ;;  %s380_s9 = scalar_lea.sflag [#allocation4], %s379_s24 }
 0x182   : > { %p541_p0 = pnand %p1025_p11, %p1024_p12 }
 0x184   : > { %728 = dma.done.wait (!%p541_p0), %s380_s9, 128  }
 0x185   : > { %730 = vsyncadd (!%p541_p0), %s380_s9, 4294967168  ;;  %s20_s17 = sadd.s32 1, %s753_s17   ;;  %s1026_s12 = smov %s737_s13 }
 0x186   : > { %p17_p5 = scmp.ge.s32.totalorder %s20_s17, 4   ;;  %s1027_s13 = smov %s741_s14 }
 0x187   : > { %s1028_s14 = smov %s887_s5  ;;  %s1029_s15 = smov %s749_s16 }
 0x188   : > { %s1030_s16 = smov %s1032_s28  ;;  %19 = sbr.rel (!%p17_p5) target bundleno = 7 (0x7), region = 85 }
 0x18f   :  { %385 = vsyncpa [#allocation3], 1 }
 0x190   :  { %387 = vsyncpa [#allocation3 + $0x1], 1 }
 0x191   :  { %388 = vsyncpa [#allocation6], 1 }
 0x192   :  { %389 = vsyncpa [#allocation4], 1 }
 0x193   :  { %391 = vsyncpa [#allocation4 + $0x1], 1 }

</bundles_post_ra>
